<compile_context>
chip_gen: v6e
topology: v6e:2x2x1
jax: 0.10.0
libtpu: 0.0.40
codegen_flags: <defaults>
</compile_context>

<pallas_src>
import functools

import jax
import jax.numpy as jnp
from jax.experimental import pallas as pl
from jax.experimental.pallas import tpu as pltpu


# ----------------------------------------------------------------------------
# helpers
# ----------------------------------------------------------------------------
def _round_up(x, m):
    return ((x + m - 1) // m) * m


@functools.lru_cache(maxsize=1)
def _num_tensorcores():
    """TensorCores per chip (v5e/v6e: 1, v7x: 2). Perf hint only; default 1."""
    try:
        info = pltpu.get_tpu_info()
        for attr in ("num_tensorcores", "tensorcores_per_chip", "num_cores",
                     "cores_per_chip", "core_count"):
            v = getattr(info, attr, None)
            if isinstance(v, int) and v > 0:
                return v
    except Exception:
        pass
    try:
        v = getattr(jax.devices()[0], "num_cores", None)
        if isinstance(v, int) and v > 0:
            return v
    except Exception:
        pass
    return 1


# ----------------------------------------------------------------------------
# Pallas kernels: fused Linear -> ReLU -> Linear -> per-row L2 normalize
# ----------------------------------------------------------------------------
def _mlp_l2norm_kernel(x_ref, w1_ref, b1_ref, w2_ref, b2_ref, o_ref):
    """p == 1 path (real CUT configs, nc >= 128): no norm-mixer matmul."""
    x = x_ref[...]                                            # (tm, c_in)
    h = jnp.dot(x, w1_ref[...], preferred_element_type=jnp.float32) + b1_ref[...]
    h = jnp.maximum(h, 0.0)
    y = jnp.dot(h.astype(w2_ref.dtype), w2_ref[...],
                preferred_element_type=jnp.float32) + b2_ref[...]
    # ||y||^2 as a cross-lane row-sum on the XLU (its slot is otherwise idle);
    # no extra MXU matmul, no resident mixer buffer, no bf16 truncation of it.
    normsq = jnp.sum(y * y, axis=-1, keepdims=True)
    inv = pl.reciprocal(jnp.sqrt(normsq) + 1e-7, approx=True)  # EUP
    o_ref[...] = (y * inv).astype(o_ref.dtype)


def _mlp_l2norm_packed_kernel(x_ref, w1_ref, b1_ref, w2_ref, b2_ref, s_ref, o_ref):
    """p > 1 path (nc < 128 and c_in < 128): p logical rows per 128-lane slab
    via block-diagonal weights; per-logical-row ||y||^2 via a tiny 128x128
    block-diagonal all-ones mixer (segment-sum broadcast)."""
    x = x_ref[...]                                            # (tm, p*c_in)
    h = jnp.dot(x, w1_ref[...], preferred_element_type=jnp.float32) + b1_ref[...]
    h = jnp.maximum(h, 0.0)
    y = jnp.dot(h.astype(w2_ref.dtype), w2_ref[...],
                preferred_element_type=jnp.float32) + b2_ref[...]
    normsq = jnp.dot(y * y, s_ref[...], preferred_element_type=jnp.float32)
    inv = pl.reciprocal(jnp.sqrt(normsq) + 1e-7, approx=True)
    o_ref[...] = (y * inv).astype(o_ref.dtype)


# ----------------------------------------------------------------------------
# Weight preparation (hoisted out of the per-forward path; build once, reuse)
# ----------------------------------------------------------------------------
def init_patch_sample_f_params(key, input_nc, nc, init_gain=0.02):
    """Deterministic 'normal' init (init_type='normal', gain=init_gain), biases zero."""
    k1, k2 = jax.random.split(key)
    w1 = jax.random.normal(k1, (input_nc, nc), jnp.float32) * init_gain
    b1 = jnp.zeros((1, nc), jnp.float32)
    w2 = jax.random.normal(k2, (nc, nc), jnp.float32) * init_gain
    b2 = jnp.zeros((1, nc), jnp.float32)
    return dict(w1=w1, b1=b1, w2=w2, b2=b2)


def prepare_patch_sample_f(params, *, mxu_dtype=jnp.bfloat16):
    """Pack / tile / cast the MLP weights once.  Returns (prep_dict, p)."""
    w1 = jnp.asarray(params["w1"], jnp.float32)
    b1 = jnp.asarray(params["b1"], jnp.float32).reshape(1, -1)
    w2 = jnp.asarray(params["w2"], jnp.float32)
    b2 = jnp.asarray(params["b2"], jnp.float32).reshape(1, -1)
    c_in, nc = w1.shape
    # Lane-dense packing only pays when BOTH dims are narrow: nc < 128 (else the
    # store is already full-width) and c_in < 128 (else the kron'd W1 does p x
    # redundant MXU passes over zero blocks).
    p = 128 // nc if (nc < 128 and 128 % nc == 0 and c_in < 128) else 1
    if p > 1:
        w1 = jnp.kron(jnp.eye(p, dtype=w1.dtype), w1)                 # (p*c_in, p*nc)
        w2 = jnp.kron(jnp.eye(p, dtype=w2.dtype), w2)                 # (p*nc,  p*nc)
        b1 = jnp.tile(b1, (1, p))
        b2 = jnp.tile(b2, (1, p))
        s = jnp.kron(jnp.eye(p, dtype=jnp.float32), jnp.ones((nc, nc), jnp.float32))
    else:
        s = None
    if mxu_dtype is not None:
        w1 = w1.astype(mxu_dtype)
        w2 = w2.astype(mxu_dtype)
    return dict(w1=w1, b1=b1, w2=w2, b2=b2, s=s), p


# ----------------------------------------------------------------------------
# Fused gather + shared-MLP + L2 norm (one jit, one pallas_call for all layers)
# ----------------------------------------------------------------------------
@functools.partial(jax.jit, static_argnames=("p", "tm", "num_cores", "out_dtype"))
def _fused_sample_mlp(feats, patch_ids, w1, b1, w2, b2, s, *,
                      p, tm, num_cores, out_dtype):
    # Gather in NCHW space FIRST (only O(B*P*C) bytes move; the full feature map
    # is never re-laid-out), then feed EVERY layer through the single shared MLP
    # in one pallas_call.  All glue (gather/transpose/concat/pad) lives in this
    # jit so XLA fuses the copies instead of round-tripping x_all through HBM.
    samples, sizes = [], []
    for feat, pid in zip(feats, patch_ids):
        B, C, H, W = feat.shape
        g = jnp.take(feat.reshape(B, C, H * W), pid, axis=2)           # (B, C, P)
        samples.append(jnp.transpose(g, (0, 2, 1)).reshape(-1, C))     # (B*P, C)
        sizes.append(B * pid.shape[0])
    x = samples[0] if len(samples) == 1 else jnp.concatenate(samples, axis=0)
    x = x.astype(w1.dtype)          # bf16 on the default path: halves x DMA bytes

    n_rows, c_in = x.shape
    nc_p = w2.shape[1]              # packed output width (= p * nc)

    # Pack p logical rows per 128-lane physical row (no-op when p == 1).
    n_pad = _round_up(n_rows, p)
    if n_pad != n_rows:
        x = jnp.pad(x, ((0, n_pad - n_rows), (0, 0)))     # zero rows are harmless
    R = n_pad // p
    xp = x.reshape(R, p * c_in)

    # Row tiling: one big tile on single-TC chips (v5e/v6e); near-equal
    # row-aligned split across TCs on multi-core chips (v7x).  Per-step VMEM is
    # tiny at these sizes, so tiles grow rather than shrink.
    row_align = 16                  # covers bf16 (16-row packing) and f32 (8)
    if num_cores > 1:
        tm_eff = max(row_align, min(tm, _round_up(pl.cdiv(R, num_cores), row_align)))
    else:
        tm_eff = max(row_align, min(tm, _round_up(R, row_align)))
    r_pad = _round_up(R, tm_eff)
    if r_pad != R:
        xp = jnp.pad(xp, ((0, r_pad - R), (0, 0)))
    grid = (r_pad // tm_eff,)

    # Constant index_maps -> the weights are fetched once and stay VMEM-resident
    # across grid steps (no per-step refetch).
    if p == 1:
        kernel = _mlp_l2norm_kernel
        operands = (xp, w1, b1, w2, b2)
        in_specs = [
            pl.BlockSpec((tm_eff, c_in), lambda i: (i, 0)),
            pl.BlockSpec(w1.shape, lambda i: (0, 0)),
            pl.BlockSpec(b1.shape, lambda i: (0, 0)),
            pl.BlockSpec(w2.shape, lambda i: (0, 0)),
            pl.BlockSpec(b2.shape, lambda i: (0, 0)),
        ]
    else:
        kernel = _mlp_l2norm_packed_kernel
        operands = (xp, w1, b1, w2, b2, s)
        in_specs = [
            pl.BlockSpec((tm_eff, p * c_in), lambda i: (i, 0)),
            pl.BlockSpec(w1.shape, lambda i: (0, 0)),
            pl.BlockSpec(b1.shape, lambda i: (0, 0)),
            pl.BlockSpec(w2.shape, lambda i: (0, 0)),
            pl.BlockSpec(b2.shape, lambda i: (0, 0)),
            pl.BlockSpec(s.shape, lambda i: (0, 0)),
        ]

    out = pl.pallas_call(
        kernel,
        out_shape=jax.ShapeDtypeStruct((r_pad, nc_p), out_dtype),
        grid_spec=pltpu.PrefetchScalarGridSpec(
            num_scalar_prefetch=0,
            grid=grid,
            in_specs=in_specs,
            out_specs=pl.BlockSpec((tm_eff, nc_p), lambda i: (i, 0)),
        ),
        compiler_params=pltpu.CompilerParams(
            dimension_semantics=("parallel",),
        ),
    )(*operands)

    # Unpack (p > 1 only; real configs with nc >= 128 skip this relayout).
    nc = nc_p // p
    y = out[:R]
    if p > 1:
        y = y.reshape(R * p, nc)
    y = y[:n_rows]

    # Split back into per-layer chunks (static sizes).
    outs, off = [], 0
    for n in sizes:
        outs.append(y[off:off + n])
        off += n
    return tuple(outs)


# ----------------------------------------------------------------------------
# PatchSampleF forward
# ----------------------------------------------------------------------------
def patch_sample_f_forward(feats, params, *, num_patches=64, patch_ids=None,
                           key=None, use_mlp=True, tm=1024,
                           mxu_dtype=jnp.bfloat16, prepared=None,
                           out_dtype=jnp.float32):
    """feats: list of NCHW arrays.  Returns (return_feats, return_ids).

    `prepared` (from prepare_patch_sample_f) should be built once and reused;
    when omitted it is rebuilt from `params` on every call."""
    if num_patches == 0:
        # TODO(synk): num_patches==0 path (full-map MLP + spatial Normalize +
        # reshape back to NCHW) not implemented in this kernel.
        raise NotImplementedError("num_patches == 0 path not implemented")

    if key is None:
        key = jax.random.PRNGKey(0)

    return_ids = []
    for feat_id, feat in enumerate(feats):
        hw = feat.shape[2] * feat.shape[3]
        if patch_ids is not None:
            pid = jnp.asarray(patch_ids[feat_id], dtype=jnp.int32)
        else:
            key, sub = jax.random.split(key)
            n_take = int(min(num_patches, hw))
            pid = jax.random.permutation(sub, hw)[:n_take].astype(jnp.int32)
        return_ids.append(pid)

    if use_mlp:
        if prepared is None:
            prepared = prepare_patch_sample_f(params, mxu_dtype=mxu_dtype)
        prep, p = prepared
        c_in = prep["w1"].shape[0] // p
        for feat in feats:
            if feat.shape[1] != c_in:
                # This module (per the spec) uses ONE shared MLP for all layers.
                raise ValueError("shared MLP requires every feature layer to "
                                 "have input_nc channels")
        return_feats = list(_fused_sample_mlp(
            tuple(jnp.asarray(f) for f in feats), tuple(return_ids),
            prep["w1"], prep["b1"], prep["w2"], prep["b2"], prep["s"],
            p=p, tm=tm, num_cores=_num_tensorcores(), out_dtype=out_dtype))
    else:
        # no-MLP path: tiny per-layer gather + L2 norm — plain XLA.
        return_feats = []
        for feat, pid in zip(feats, return_ids):
            B, C, H, W = feat.shape
            g = jnp.take(feat.reshape(B, C, H * W), pid, axis=2)
            xs = jnp.transpose(g, (0, 2, 1)).reshape(-1, C)
            norm = jnp.sqrt(jnp.sum(xs * xs, axis=1, keepdims=True))
            return_feats.append(xs / (norm + 1e-7))

    return return_feats, return_ids


# ----------------------------------------------------------------------------
# Self-test
# ----------------------------------------------------------------------------
if __name__ == "__main__":
    import numpy as np

    key = jax.random.PRNGKey(0)
    k_feat1, k_feat2, k_params, k_sample = jax.random.split(key, 4)

    input_nc, nc = 16, 32
    num_patches = 64
    B = 2

    feat1 = jax.random.normal(k_feat1, (B, input_nc, 16, 16), jnp.float32)
    feat2 = jax.random.normal(k_feat2, (B, input_nc, 8, 8), jnp.float32)
    feats = [feat1, feat2]

    params = init_patch_sample_f_params(k_params, input_nc, nc, init_gain=0.02)

    # Prepared (packed / cast) weights built ONCE and reused across forwards.
    prep_bf16 = prepare_patch_sample_f(params, mxu_dtype=jnp.bfloat16)
    prep_f32 = prepare_patch_sample_f(params, mxu_dtype=None)

    # Pass 1: default bf16 MXU inputs, fresh random patch ids.
    out_bf16, ids = patch_sample_f_forward(
        feats, params, num_patches=num_patches, key=k_sample,
        use_mlp=True, prepared=prep_bf16)
    out_bf16 = [jax.block_until_ready(f) for f in out_bf16]

    # Pass 2: f32 MXU inputs, reusing the sampled ids (supplied-patch_ids path).
    out_f32, _ = patch_sample_f_forward(
        feats, params, num_patches=num_patches, patch_ids=ids,
        use_mlp=True, prepared=prep_f32)
    out_f32 = [jax.block_until_ready(f) for f in out_f32]

    # Exact numpy f32 reference of gather + shared MLP + Normalize(2).
    w1_np = np.asarray(params["w1"], np.float32)
    b1_np = np.asarray(params["b1"], np.float32)
    w2_np = np.asarray(params["w2"], np.float32)
    b2_np = np.asarray(params["b2"], np.float32)

    def ref_layer(feat, pid):
        feat = np.asarray(feat, np.float32)
        pid = np.asarray(pid)
        Bc, C, H, W = feat.shape
        x = feat.reshape(Bc, C, H * W)[:, :, pid]
        x = np.transpose(x, (0, 2, 1)).reshape(-1, C)
        h = np.maximum(x @ w1_np + b1_np, 0.0)
        y = h @ w2_np + b2_np
        nrm = np.sqrt((y * y).sum(axis=1, keepdims=True))
        return y / (nrm + 1e-7)

    for feat, pid, got16, got32 in zip(feats, ids, out_bf16, out_f32):
        ref = ref_layer(feat, pid)
        assert got16.shape == ref.shape, "bf16 shape mismatch"
        assert got32.shape == ref.shape, "f32 shape mismatch"
        # bf16 MXU inputs: ~0.5-1% relative rounding through the two matmuls.
        assert np.allclose(np.asarray(got16), ref, atol=3e-2, rtol=3e-2), "bf16 mismatch"
        # f32 inputs: MXU is still bf16 at default precision + approx reciprocal.
        assert np.allclose(np.asarray(got32), ref, atol=3e-2, rtol=3e-2), "f32 mismatch"

    print("KERNEL_OK")
</pallas_src>

<mosaic_0001>
module attributes {stable_mosaic.version = 11 : i64} {
  func.func @_mlp_l2norm_packed_kernel(%arg0: i32, %arg1: memref<64x64xbf16, #tpu.memory_space<vmem>>, %arg2: memref<64x128xbf16, #tpu.memory_space<vmem>>, %arg3: memref<1x128xf32, #tpu.memory_space<vmem>>, %arg4: memref<128x128xbf16, #tpu.memory_space<vmem>>, %arg5: memref<1x128xf32, #tpu.memory_space<vmem>>, %arg6: memref<128x128xf32, #tpu.memory_space<vmem>>, %arg7: memref<64x128xf32, #tpu.memory_space<vmem>>) attributes {dimension_semantics = [#tpu.dimension_semantics<parallel>], iteration_bounds = array<i64: 1>, scalar_prefetch = 0 : i64, scratch_operands = 0 : i64, tpu.core_type = #tpu.core_type<tc>, window_params = [{transform_indices = @transform_0, window_bounds = array<i64: 64, 64>}, {pipeline_mode = #tpu.pipeline_mode<synchronous>, transform_indices = @transform_1, window_bounds = array<i64: 64, 128>}, {pipeline_mode = #tpu.pipeline_mode<synchronous>, transform_indices = @transform_2, window_bounds = array<i64: 1, 128>}, {pipeline_mode = #tpu.pipeline_mode<synchronous>, transform_indices = @transform_3, window_bounds = array<i64: 128, 128>}, {pipeline_mode = #tpu.pipeline_mode<synchronous>, transform_indices = @transform_4, window_bounds = array<i64: 1, 128>}, {pipeline_mode = #tpu.pipeline_mode<synchronous>, transform_indices = @transform_5, window_bounds = array<i64: 128, 128>}, {transform_indices = @transform_6, window_bounds = array<i64: 64, 128>}]} {
    %c0 = arith.constant 0 : index
    %c0_0 = arith.constant 0 : index
    %0 = vector.load %arg1[%c0, %c0_0] : memref<64x64xbf16, #tpu.memory_space<vmem>>, vector<64x64xbf16>
    %c0_1 = arith.constant 0 : index
    %c0_2 = arith.constant 0 : index
    %1 = vector.load %arg2[%c0_1, %c0_2] : memref<64x128xbf16, #tpu.memory_space<vmem>>, vector<64x128xbf16>
    %cst = arith.constant dense<0.000000e+00> : vector<64x128xf32>
    %2 = tpu.matmul %0, %1, %cst {dimension_numbers = #tpu.dot_dimension_numbers<[1], [0], [0], [1], [0, 0, 1, 1], [], []>} : vector<64x64xbf16>, vector<64x128xbf16>, vector<64x128xf32> -> vector<64x128xf32>
    %c0_3 = arith.constant 0 : index
    %c0_4 = arith.constant 0 : index
    %3 = vector.load %arg3[%c0_3, %c0_4] : memref<1x128xf32, #tpu.memory_space<vmem>>, vector<1x128xf32>
    %4 = vector.broadcast %3 : vector<1x128xf32> to vector<64x128xf32>
    %5 = arith.addf %2, %4 : vector<64x128xf32>
    %cst_5 = arith.constant 0.000000e+00 : f32
    %6 = vector.broadcast %cst_5 : f32 to vector<64x128xf32>
    %7 = arith.maximumf %5, %6 : vector<64x128xf32>
    %8 = arith.truncf %7 : vector<64x128xf32> to vector<64x128xbf16>
    %c0_6 = arith.constant 0 : index
    %c0_7 = arith.constant 0 : index
    %9 = vector.load %arg4[%c0_6, %c0_7] : memref<128x128xbf16, #tpu.memory_space<vmem>>, vector<128x128xbf16>
    %cst_8 = arith.constant dense<0.000000e+00> : vector<64x128xf32>
    %10 = tpu.matmul %8, %9, %cst_8 {dimension_numbers = #tpu.dot_dimension_numbers<[1], [0], [0], [1], [0, 0, 1, 1], [], []>} : vector<64x128xbf16>, vector<128x128xbf16>, vector<64x128xf32> -> vector<64x128xf32>
    %c0_9 = arith.constant 0 : index
    %c0_10 = arith.constant 0 : index
    %11 = vector.load %arg5[%c0_9, %c0_10] : memref<1x128xf32, #tpu.memory_space<vmem>>, vector<1x128xf32>
    %12 = vector.broadcast %11 : vector<1x128xf32> to vector<64x128xf32>
    %13 = arith.addf %10, %12 : vector<64x128xf32>
    %14 = arith.mulf %13, %13 : vector<64x128xf32>
    %c0_11 = arith.constant 0 : index
    %c0_12 = arith.constant 0 : index
    %15 = vector.load %arg6[%c0_11, %c0_12] : memref<128x128xf32, #tpu.memory_space<vmem>>, vector<128x128xf32>
    %cst_13 = arith.constant dense<0.000000e+00> : vector<64x128xf32>
    %16 = tpu.matmul %14, %15, %cst_13 {dimension_numbers = #tpu.dot_dimension_numbers<[1], [0], [0], [1], [0, 0, 1, 1], [], []>} : vector<64x128xf32>, vector<128x128xf32>, vector<64x128xf32> -> vector<64x128xf32>
    %17 = math.sqrt %16 : vector<64x128xf32>
    %cst_14 = arith.constant 1.000000e-07 : f32
    %18 = vector.broadcast %cst_14 : f32 to vector<64x128xf32>
    %19 = arith.addf %17, %18 : vector<64x128xf32>
    %20 = tpu.reciprocal %19 {approx = true} : vector<64x128xf32> -> vector<64x128xf32>
    %21 = arith.mulf %13, %20 : vector<64x128xf32>
    %c0_15 = arith.constant 0 : index
    %c0_16 = arith.constant 0 : index
    %22 = vector.load %arg7[%c0_15, %c0_16] : memref<64x128xf32, #tpu.memory_space<vmem>>, vector<64x128xf32>
    tpu.vector_store %arg7[%c0_15, %c0_16], %21 {strides = array<i32>} : memref<64x128xf32, #tpu.memory_space<vmem>>, vector<64x128xf32>,
    return
  }
  func.func @transform_0(%arg0: i32) -> (i32, i32) {
    %c0_i32 = arith.constant 0 : i32
    %c0_i32_0 = arith.constant 0 : i32
    return %arg0, %c0_i32 : i32, i32
  }
  func.func @transform_1(%arg0: i32) -> (i32, i32) {
    %c0_i32 = arith.constant 0 : i32
    %c0_i32_0 = arith.constant 0 : i32
    %c0_i32_1 = arith.constant 0 : i32
    return %c0_i32, %c0_i32_0 : i32, i32
  }
  func.func @transform_2(%arg0: i32) -> (i32, i32) {
    %c0_i32 = arith.constant 0 : i32
    %c0_i32_0 = arith.constant 0 : i32
    %c0_i32_1 = arith.constant 0 : i32
    return %c0_i32, %c0_i32_0 : i32, i32
  }
  func.func @transform_3(%arg0: i32) -> (i32, i32) {
    %c0_i32 = arith.constant 0 : i32
    %c0_i32_0 = arith.constant 0 : i32
    %c0_i32_1 = arith.constant 0 : i32
    return %c0_i32, %c0_i32_0 : i32, i32
  }
  func.func @transform_4(%arg0: i32) -> (i32, i32) {
    %c0_i32 = arith.constant 0 : i32
    %c0_i32_0 = arith.constant 0 : i32
    %c0_i32_1 = arith.constant 0 : i32
    return %c0_i32, %c0_i32_0 : i32, i32
  }
  func.func @transform_5(%arg0: i32) -> (i32, i32) {
    %c0_i32 = arith.constant 0 : i32
    %c0_i32_0 = arith.constant 0 : i32
    %c0_i32_1 = arith.constant 0 : i32
    return %c0_i32, %c0_i32_0 : i32, i32
  }
  func.func @transform_6(%arg0: i32) -> (i32, i32) {
    %c0_i32 = arith.constant 0 : i32
    %c0_i32_0 = arith.constant 0 : i32
    return %arg0, %c0_i32 : i32, i32
  }
}

</mosaic_0001>

<bundles_post_ra>
// kernel: _fused_sample_mlp.1
= control target key start
LH: loop header
LB: loop body
LE: loop exit
PB: predicated region body
PF: predicated region fallthrough
CT: control target
= control target key end

     0   :  { %vm91_vm0 = vcmask 523264   ;;  %s957_s1 = inlined_call_operand.vmem [shape: bf16[64,128], index: 1, kind: input, shape index: {}]   ;;  %s958_s0 = inlined_call_operand.vmem [shape: bf16[64,64], index: 0, kind: input, shape index: {}]   ;;  %s959_s3 = inlined_call_operand.vmem [shape: bf16[128,128], index: 3, kind: input, shape index: {}]   ;;  %s960_s5 = inlined_call_operand.vmem [shape: f32[128,128], index: 5, kind: input, shape index: {}]   ;;  %s961_s2 = inlined_call_operand.vmem [shape: f32[1,128], index: 2, kind: input, shape index: {}]   ;;  %s962_s4 = inlined_call_operand.vmem [shape: f32[1,128], index: 4, kind: input, shape index: {}]   ;;  %s963_s6 = inlined_call_operand.vmem [shape: f32[64,128], index: 6, kind: output, shape index: {}]  }
   0x1   :  { %v688_v0 = vld [vmem:[%s957_s1 + $0x18] sm:$0xff]   ;;  %v689_v1 = vld [vmem:[%s957_s1 + $0x10] sm:$0xff]   ;;  %v690_v2 = vld [vmem:[%s957_s1 + $0x8] sm:$0xff]  }
   0x2   :  { %604 = vmatprep.subr.bf16.mxu0 %v688_v0  ;;  %v692_v3 = vld [vmem:[%s958_s0] sm:$0xff]   ;;  %v696_v5 = vld [vmem:[%s959_s3 + $0x38] sm:$0xff]   ;;  %v697_v6 = vld [vmem:[%s959_s3 + $0x30] sm:$0xff]  }
   0x3   :  { %605 = vmatpush3.bf16.msra.mxu0 %v688_v0  ;;  %612 = vmatprep.mubr.msk.bf16.mxu0 %vm91_vm0, %v692_v3  ;;  %v691_v4 = vld [vmem:[%s957_s1] sm:$0xff]   ;;  %v693_v7 = vld [vmem:[%s958_s0 + $0x8] sm:$0xff]   ;;  %v694_v9 = vld [vmem:[%s958_s0 + $0x10] sm:$0xff]  }
   0x4   :  { %606 = vmatprep.subr.bf16.mxu0 %v689_v1  ;;  %620 = vmatprep.subr.bf16.mxu1 %v696_v5  ;;  %v698_v8 = vld [vmem:[%s959_s3 + $0x28] sm:$0xff]   ;;  %v699_v10 = vld [vmem:[%s959_s3 + $0x20] sm:$0xff]   ;;  %v700_v11 = vld [vmem:[%s959_s3 + $0x18] sm:$0xff]  }
   0x5   :  { %621 = vmatpush3.bf16.msra.mxu1 %v696_v5  ;;  %v695_v12 = vld [vmem:[%s958_s0 + $0x18] sm:$0xff]   ;;  %v701_v13 = vld [vmem:[%s959_s3 + $0x10] sm:$0xff]   ;;  %v702_v14 = vld [vmem:[%s959_s3 + $0x8] sm:$0xff]  }
   0x6   :  { %622 = vmatprep.subr.bf16.mxu1 %v697_v6  ;;  %v703_v15 = vld [vmem:[%s959_s3] sm:$0xff]   ;;  %v340_v16 = vld [vmem:[%s960_s5 + $0x78] sm:$0xff]  ;;  %v339_v17 = vld [vmem:[%s960_s5 + $0x70] sm:$0xff] }
   0x7   :  { %607 = vmatpush3.bf16.msra.mxu0 %v689_v1  ;;  %v338_v18 = vld [vmem:[%s960_s5 + $0x68] sm:$0xff]  ;;  %v337_v19 = vld [vmem:[%s960_s5 + $0x60] sm:$0xff]  ;;  %v336_v20 = vld [vmem:[%s960_s5 + $0x58] sm:$0xff] }
   0x8   :  { %608 = vmatprep.subr.bf16.mxu0 %v690_v2  ;;  %v335_v21 = vld [vmem:[%s960_s5 + $0x50] sm:$0xff]  ;;  %v334_v22 = vld [vmem:[%s960_s5 + $0x48] sm:$0xff]  ;;  %v333_v23 = vld [vmem:[%s960_s5 + $0x40] sm:$0xff] }
   0x9   :  { %623 = vmatpush3.bf16.msra.mxu1 %v697_v6  ;;  %v332_v24 = vld [vmem:[%s960_s5 + $0x38] sm:$0xff]  ;;  %v331_v25 = vld [vmem:[%s960_s5 + $0x30] sm:$0xff]  ;;  %v330_v26 = vld [vmem:[%s960_s5 + $0x28] sm:$0xff] }
   0xa   :  { %624 = vmatprep.subr.bf16.mxu1 %v698_v8  ;;  %v538_v29 = vld [vmem:[%s961_s2] ss:$0 sm:$0xff]  ;;  %v328_v57 = vld [vmem:[%s960_s5 + $0x18] sm:$0xff]  ;;  %v327_v58 = vld [vmem:[%s960_s5 + $0x10] sm:$0xff] }
   0xb   :  { %609 = vmatpush3.bf16.msra.mxu0 %v690_v2  ;;  %v329_v56 = vld [vmem:[%s960_s5 + $0x20] sm:$0xff]  ;;  %v326_v59 = vld [vmem:[%s960_s5 + $0x8] sm:$0xff] }
   0xc   :  { %610 = vmatprep.subr.bf16.mxu0 %v691_v4  ;;  %v325_v60 = vld [vmem:[%s960_s5] sm:$0xff] }
   0xd   :  { %625 = vmatpush3.bf16.msra.mxu1 %v698_v8  ;;  %v551_v62 = vld [vmem:[%s962_s4] ss:$0 sm:$0xff] }
   0xe   :  { %626 = vmatprep.subr.bf16.mxu1 %v699_v10 }
   0xf   :  { %611 = vmatpush3.bf16.msra.mxu0 %v691_v4 }
  0x10   :  { %644 = vmatprep.subr.mxu0 %v340_v16 }
  0x11   :  { %627 = vmatpush3.bf16.msra.mxu1 %v699_v10 }
  0x12   :  { %613 = vmatmul.mubr.msk.bf16.vlgmr.msra.gmra.mxu0 %vm91_vm0, %v693_v7  ;;  %628 = vmatprep.subr.bf16.mxu1 %v700_v11 }
  0x13   :  { %616 = vmatprep.mubr.msk.bf16.mxu0 %vm91_vm0, %v694_v9  ;;  %645 = vmatpush3.msra.mxu0 %v340_v16 }
  0x14   :  { %646 = vmatprep.subr.mxu0 %v339_v17 }
  0x15   :  { %629 = vmatpush3.bf16.msra.mxu1 %v700_v11  ;;  %647 = vmatpush3.msra.mxu0 %v339_v17 }
  0x16   :  { %630 = vmatprep.subr.bf16.mxu1 %v701_v13  ;;  %648 = vmatprep.subr.mxu0 %v338_v18 }
  0x17   :  { %649 = vmatpush3.msra.mxu0 %v338_v18 }
  0x18   :  { %650 = vmatprep.subr.mxu0 %v337_v19 }
  0x19   :  { %631 = vmatpush3.bf16.msra.mxu1 %v701_v13  ;;  %651 = vmatpush3.msra.mxu0 %v337_v19 }
  0x1a   :  { %617 = vmatmul.mubr.msk.bf16.gmra.mxu0 %vm91_vm0, %v695_v12  ;;  %632 = vmatprep.subr.bf16.mxu1 %v702_v14 }
  0x1b   :  { %652 = vmatprep.subr.mxu0 %v336_v20 }
  0x1c   :  { %653 = vmatpush3.msra.mxu0 %v336_v20 }
  0x1d   :  { %633 = vmatpush3.bf16.msra.mxu1 %v702_v14  ;;  %654 = vmatprep.subr.mxu0 %v335_v21 }
  0x1e   :  { %634 = vmatprep.subr.bf16.mxu1 %v703_v15  ;;  %655 = vmatpush3.msra.mxu0 %v335_v21 }
  0x1f   :  { %656 = vmatprep.subr.mxu0 %v334_v22 }
  0x20   :  { %657 = vmatpush3.msra.mxu0 %v334_v22 }
  0x21   :  { %635 = vmatpush3.bf16.msra.mxu1 %v703_v15  ;;  %658 = vmatprep.subr.mxu0 %v333_v23 }
  0x22   :  { %659 = vmatpush3.msra.mxu0 %v333_v23 }
  0x23   :  { %660 = vmatprep.subr.mxu0 %v332_v24 }
  0x24   :  { %661 = vmatpush3.msra.mxu0 %v332_v24 }
  0x25   :  { %662 = vmatprep.subr.mxu0 %v331_v25 }
  0x26   :  { %663 = vmatpush3.msra.mxu0 %v331_v25 }
  0x27   :  { %664 = vmatprep.subr.mxu0 %v330_v26 }
  0x28   :  { %665 = vmatpush3.msra.mxu0 %v330_v26 }
  0x29   :  { %666 = vmatprep.subr.mxu0 %v329_v56 }
  0x2a   :  { %667 = vmatpush3.msra.mxu0 %v329_v56 }
  0x2b   :  { %668 = vmatprep.subr.mxu0 %v328_v57 }
  0x2c   :  { %669 = vmatpush3.msra.mxu0 %v328_v57 }
  0x2d   :  { %670 = vmatprep.subr.mxu0 %v327_v58 }
  0x2e   :  { %671 = vmatpush3.msra.mxu0 %v327_v58 }
  0x2f   :  { %672 = vmatprep.subr.mxu0 %v326_v59 }
  0x30   :  { %673 = vmatpush3.msra.mxu0 %v326_v59 }
  0x31   :  { %674 = vmatprep.subr.mxu0 %v325_v60 }
  0x32   :  { %675 = vmatpush3.msra.mxu0 %v325_v60 }
  0xd2   :  { %v614_v27 = vpop.f32.mrf.mxu0 }
  0xd3   :  { %v147_v33 = vadd.f32 %v614_v27, %v538_v29 }
  0xd4   :  { %v138_v28 = vpop.f32.mrf.mxu0 }
  0xd5   :  { %v139_v31 = vadd.f32 %v538_v29, %v138_v28  ;;  %v171_v40 = vmax.f32 %v147_v33, 0.0 }
  0xd6   :  { %v615_v30 = vpop.f32.mrf.mxu0 }
  0xd7   :  { %v150_v32 = vadd.f32 %v615_v30, %v538_v29  ;;  %v169_v38 = vmax.f32 %v139_v31, 0.0 }
  0xd8   :  { %v141_v34 = vpop.f32.mrf.mxu0 }
  0xd9   :  { %v142_v35 = vadd.f32 %v538_v29, %v141_v34  ;;  %v172_v36 = vmax.f32 %v150_v32, 0.0 }
  0xda   :  { %v618_v37 = vpop.f32.mrf.mxu0 }
  0xdb   :  { %v170_v39 = vmax.f32 %v142_v35, 0.0  ;;  %v178_v43 = vpack.c.bf16 %v172_v36, %v171_v40  ;;  %v163_v47 = vadd.f32 %v618_v37, %v538_v29 }
  0xdc   :  { %v154_v41 = vpop.f32.mrf.mxu0 }
  0xdd   :  { %v177_v42 = vpack.c.bf16 %v170_v39, %v169_v38  ;;  %v155_v45 = vadd.f32 %v538_v29, %v154_v41  ;;  %v175_v53 = vmax.f32 %v163_v47, 0.0 }
  0xde   :  { %v619_v44 = vpop.f32.mrf.mxu0 }
  0xdf   :  { %v166_v46 = vadd.f32 %v619_v44, %v538_v29  ;;  %636 = vmatprep.mubr.bf16.mxu1 %v177_v42  ;;  %v173_v51 = vmax.f32 %v155_v45, 0.0 }
  0xe0   :  { %v157_v48 = vpop.f32.mrf.mxu0  ;;  %637 = vmatmul.mubr.bf16.vlgmr.msra.gmra.mxu1 %v178_v43 }
  0xe1   :  { %v158_v49 = vadd.f32 %v538_v29, %v157_v48  ;;  %v176_v50 = vmax.f32 %v166_v46, 0.0 }
  0xe3   :  { %v174_v52 = vmax.f32 %v158_v49, 0.0  ;;  %v180_v55 = vpack.c.bf16 %v176_v50, %v175_v53 }
  0xe5   :  { %v179_v54 = vpack.c.bf16 %v174_v52, %v173_v51 }
  0xe7   :  { %640 = vmatprep.mubr.bf16.mxu1 %v179_v54 }
  0xe8   :  { %641 = vmatmul.mubr.bf16.gmra.mxu1 %v180_v55 }
 0x1a0   :  { %v638_v61 = vpop.f32.mrf.mxu1 }
 0x1a1   :  { %v881_v3 = vadd.f32 %v638_v61, %v551_v62 }
 0x1a2   :  { %v286_v63 = vpop.f32.mrf.mxu1 }
 0x1a3   :  { %v877_v0 = vadd.f32 %v551_v62, %v286_v63  ;;  %v319_v9 = vmul.f32 %v881_v3, %v881_v3 }
 0x1a4   :  { %v639_v1 = vpop.f32.mrf.mxu1 }
 0x1a5   :  { %v317_v2 = vmul.f32 %v877_v0, %v877_v0  ;;  %v885_v7 = vadd.f32 %v639_v1, %v551_v62 }
 0x1a6   :  { %v289_v4 = vpop.f32.mrf.mxu1 }
 0x1a7   :  { %v883_v5 = vadd.f32 %v551_v62, %v289_v4  ;;  %676 = vmatprep.mubr.f32.mxu0 %v317_v2  ;;  %v320_v13 = vmul.f32 %v885_v7, %v885_v7 }
 0x1a8   :  { %v642_v6 = vpop.f32.mrf.mxu1 }
 0x1a9   :  { %v318_v8 = vmul.f32 %v883_v5, %v883_v5  ;;  %v897_v15 = vadd.f32 %v642_v6, %v551_v62 }
 0x1aa   :  { %v302_v10 = vpop.f32.mrf.mxu1 }
 0x1ab   :  { %v891_v11 = vadd.f32 %v551_v62, %v302_v10  ;;  %677 = vmatmul.mubr.f32.vlgmr.msra.gmra.mxu0 %v318_v8  ;;  %v323_v20 = vmul.f32 %v897_v15, %v897_v15 }
 0x1ac   :  { %v643_v12 = vpop.f32.mrf.mxu1  ;;  %679 = vmatprep.mubr.f32.mxu0 %v319_v9 }
 0x1ad   :  { %v321_v14 = vmul.f32 %v891_v11, %v891_v11  ;;  %v901_v18 = vadd.f32 %v643_v12, %v551_v62 }
 0x1ae   :  { %v305_v16 = vpop.f32.mrf.mxu1 }
 0x1af   :  { %v899_v17 = vadd.f32 %v551_v62, %v305_v16  ;;  %680 = vmatmul.mubr.f32.gmra.mxu0 %v320_v13  ;;  %v324_v21 = vmul.f32 %v901_v18, %v901_v18 }
 0x1b0   :  { %682 = vmatprep.mubr.f32.mxu0 %v321_v14 }
 0x1b1   :  { %v322_v19 = vmul.f32 %v899_v17, %v899_v17 }
 0x1b3   :  { %683 = vmatmul.mubr.f32.gmra.mxu0 %v322_v19 }
 0x1b4   :  { %685 = vmatprep.mubr.f32.mxu0 %v323_v20 }
 0x1b7   :  { %686 = vmatmul.mubr.f32.gmra.mxu0 %v324_v21 }
 0x26b   :  { %v678_v22 = vpop.f32.mrf.mxu0 }
 0x26c   :  { %704 = vrsqrt.f32 %v678_v22  ;;  %vm455_vm1 = vcmp.eq.f32.partialorder %v678_v22, inf  ;;  %v458_v33 = vand.u32 2147483648, %v678_v22  ;;  %vm457_vm2 = vcmp.eq.f32.partialorder %v678_v22, 0.0 }
 0x26d   :  { %v407_v23 = vpop.f32.mrf.mxu0 }
 0x26e   :  { %706 = vrsqrt.f32 %v407_v23  ;;  %vm448_vm3 = vcmp.eq.f32.partialorder %v407_v23, inf  ;;  %v451_v38 = vand.u32 2147483648, %v407_v23  ;;  %vm450_vm4 = vcmp.eq.f32.partialorder %v407_v23, 0.0 }
 0x26f   :  { %v681_v24 = vpop.f32.mrf.mxu0 }
 0x270   :  { %708 = vrsqrt.f32 %v681_v24  ;;  %vm469_vm5 = vcmp.eq.f32.partialorder %v681_v24, inf  ;;  %vm471_vm6 = vcmp.eq.f32.partialorder %v681_v24, 0.0  ;;  %v472_v44 = vand.u32 2147483648, %v681_v24 }
 0x271   :  { %v417_v25 = vpop.f32.mrf.mxu0 }
 0x272   :  { %710 = vrsqrt.f32 %v417_v25  ;;  %vm462_vm7 = vcmp.eq.f32.partialorder %v417_v25, inf  ;;  %vm464_vm8 = vcmp.eq.f32.partialorder %v417_v25, 0.0  ;;  %v465_v50 = vand.u32 2147483648, %v417_v25 }
 0x273   :  { %v684_v26 = vpop.f32.mrf.mxu0 }
 0x274   :  { %712 = vrsqrt.f32 %v684_v26  ;;  %vm483_vm9 = vcmp.eq.f32.partialorder %v684_v26, inf  ;;  %vm485_vm10 = vcmp.eq.f32.partialorder %v684_v26, 0.0  ;;  %v486_v56 = vand.u32 2147483648, %v684_v26 }
 0x275   :  { %v427_v27 = vpop.f32.mrf.mxu0 }
 0x276   :  { %714 = vrsqrt.f32 %v427_v27  ;;  %vm476_vm11 = vcmp.eq.f32.partialorder %v427_v27, inf  ;;  %vm478_vm12 = vcmp.eq.f32.partialorder %v427_v27, 0.0  ;;  %v479_v62 = vand.u32 2147483648, %v427_v27 }
 0x277   :  { %v909_v28 = vpop.f32.mrf.mxu0 }
 0x278   :  { %716 = vrsqrt.f32 %v909_v28  ;;  %vm497_vm13 = vcmp.eq.f32.partialorder %v909_v28, inf  ;;  %vm499_vm14 = vcmp.eq.f32.partialorder %v909_v28, 0.0  ;;  %v500_v8 = vand.u32 2147483648, %v909_v28 }
 0x279   :  { %v705_v29 = vpop.eup %704  ;;  %v912_v30 = vpop.f32.mrf.mxu0 }
 0x27a   :  { %v454_v31 = vmul.f32 %v705_v29, %v678_v22  ;;  %718 = vrsqrt.f32 %v912_v30  ;;  %vm490_vm15 = vcmp.eq.f32.partialorder %v912_v30, inf  ;;  %v493_v14 = vand.u32 2147483648, %v912_v30 }
 0x27b   :  { %v707_v32 = vpop.eup %706  ;;  %vm492_vm0 = vcmp.eq.f32.partialorder %v912_v30, 0.0 }
 0x27c   :  { %v456_v34 = vsel %vm455_vm1, %v678_v22, %v454_v31  ;;  %v447_v35 = vmul.f32 %v707_v32, %v407_v23 }
 0x27d   :  { %v709_v36 = vpop.eup %708  ;;  %v459_v37 = vsel %vm457_vm2, %v458_v33, %v456_v34 }
 0x27e   :  { %v503_v39 = vadd.f32 1e-07, %v459_v37  ;;  %v449_v40 = vsel %vm448_vm3, %v407_v23, %v447_v35  ;;  %v468_v41 = vmul.f32 %v709_v36, %v681_v24 }
 0x27f   :  { %v711_v42 = vpop.eup %710  ;;  %v452_v43 = vsel %vm450_vm4, %v451_v38, %v449_v40 }
 0x280   :  { %720 = vrcp.f32 %v503_v39  ;;  %v502_v45 = vadd.f32 1e-07, %v452_v43  ;;  %v470_v46 = vsel %vm469_vm5, %v681_v24, %v468_v41  ;;  %v461_v47 = vmul.f32 %v711_v42, %v417_v25 }
 0x281   :  { %v713_v48 = vpop.eup %712  ;;  %v473_v49 = vsel %vm471_vm6, %v472_v44, %v470_v46 }
 0x282   :  { %722 = vrcp.f32 %v502_v45  ;;  %v505_v51 = vadd.f32 1e-07, %v473_v49  ;;  %v463_v52 = vsel %vm462_vm7, %v417_v25, %v461_v47  ;;  %v482_v53 = vmul.f32 %v713_v48, %v684_v26 }
 0x283   :  { %v715_v54 = vpop.eup %714  ;;  %v466_v55 = vsel %vm464_vm8, %v465_v50, %v463_v52 }
 0x284   :  { %724 = vrcp.f32 %v505_v51  ;;  %v504_v57 = vadd.f32 1e-07, %v466_v55  ;;  %v484_v58 = vsel %vm483_vm9, %v684_v26, %v482_v53  ;;  %v475_v59 = vmul.f32 %v715_v54, %v427_v27 }
 0x285   :  { %v717_v60 = vpop.eup %716  ;;  %v487_v61 = vsel %vm485_vm10, %v486_v56, %v484_v58 }
 0x286   :  { %726 = vrcp.f32 %v504_v57  ;;  %v507_v63 = vadd.f32 1e-07, %v487_v61  ;;  %v477_v1 = vsel %vm476_vm11, %v427_v27, %v475_v59  ;;  %v496_v2 = vmul.f32 %v717_v60, %v909_v28 }
 0x287   :  { %v719_v4 = vpop.eup %718  ;;  %v480_v6 = vsel %vm478_vm12, %v479_v62, %v477_v1 }
 0x288   :  { %728 = vrcp.f32 %v507_v63  ;;  %v506_v9 = vadd.f32 1e-07, %v480_v6  ;;  %v498_v10 = vsel %vm497_vm13, %v909_v28, %v496_v2  ;;  %v489_v12 = vmul.f32 %v719_v4, %v912_v30 }
 0x289   :  { %v501_v13 = vsel %vm499_vm14, %v500_v8, %v498_v10 }
 0x28a   :  { %730 = vrcp.f32 %v506_v9  ;;  %v509_v16 = vadd.f32 1e-07, %v501_v13  ;;  %v491_v19 = vsel %vm490_vm15, %v912_v30, %v489_v12 }
 0x28b   :  { %v494_v20 = vsel %vm492_vm0, %v493_v14, %v491_v19 }
 0x28c   :  { %732 = vrcp.f32 %v509_v16  ;;  %v508_v21 = vadd.f32 1e-07, %v494_v20 }
 0x28d   :  { %v721_v22 = vpop.eup %720 }
 0x28e   :  { %v519_v23 = vmul.f32 %v721_v22, %v883_v5  ;;  %734 = vrcp.f32 %v508_v21 }
 0x28f   :  { %v723_v24 = vpop.eup %722 }
 0x290   :  { %527 = vst [vmem:[%s963_s6 + $0x8] sm:$0xff] %v519_v23  ;;  %v518_v25 = vmul.f32 %v723_v24, %v877_v0 }
 0x291   :  { %v725_v26 = vpop.eup %724 }
 0x292   :  { %526 = vst [vmem:[%s963_s6] sm:$0xff] %v518_v25  ;;  %v521_v27 = vmul.f32 %v725_v26, %v885_v7 }
 0x293   :  { %v727_v28 = vpop.eup %726 }
 0x294   :  { %529 = vst [vmem:[%s963_s6 + $0x18] sm:$0xff] %v521_v27  ;;  %v520_v5 = vmul.f32 %v727_v28, %v881_v3 }
 0x295   :  { %v729_v29 = vpop.eup %728 }
 0x296   :  { %528 = vst [vmem:[%s963_s6 + $0x10] sm:$0xff] %v520_v5  ;;  %v523_v0 = vmul.f32 %v729_v29, %v899_v17 }
 0x297   :  { %v731_v30 = vpop.eup %730 }
 0x298   :  { %531 = vst [vmem:[%s963_s6 + $0x28] sm:$0xff] %v523_v0  ;;  %v522_v7 = vmul.f32 %v731_v30, %v891_v11 }
 0x299   :  { %v733_v31 = vpop.eup %732 }
 0x29a   :  { %530 = vst [vmem:[%s963_s6 + $0x20] sm:$0xff] %v522_v7  ;;  %v525_v3 = vmul.f32 %v733_v31, %v901_v18 }
 0x29b   :  { %v735_v32 = vpop.eup %734 }
 0x29c   :  { %533 = vst [vmem:[%s963_s6 + $0x38] sm:$0xff] %v525_v3  ;;  %v524_v17 = vmul.f32 %v735_v32, %v897_v15 }
 0x29e   :  { %532 = vst [vmem:[%s963_s6 + $0x30] sm:$0xff] %v524_v17 }

</bundles_post_ra>
